<compile_context>
chip_gen: v6e
topology: v6e:2x2x1
jax: 0.10.0
libtpu: 0.0.40
codegen_flags: <defaults>
</compile_context>

<pallas_src>
import jax
import jax.numpy as jnp
from jax.experimental import pallas as pl
from jax.experimental.pallas import tpu as pltpu


IN_FEATURES = 58
HIDDEN = 32
OUT_FEATURES = 13
DEFAULT_TILE_B = 512  # rows per grid step; comfortably inside VMEM on v5e/v6e/v7x


def mlp_kernel(x_ref, w1_ref, b1_ref, w2_ref, b2_ref, o_ref):
    # Hidden layer: (TB, 58) @ (58, 32) + (1, 32) -> ReLU
    # bf16 operands on the MXU, f32 accumulation.
    x_bf = x_ref[...].astype(jnp.bfloat16)
    h = jnp.dot(x_bf, w1_ref[...], preferred_element_type=jnp.float32)
    h = jnp.maximum(h + b1_ref[...], 0.0)
    # Output layer: (TB, 32) @ (32, 13) + (1, 13) -> ReLU
    y = jnp.dot(h.astype(jnp.bfloat16), w2_ref[...],
                preferred_element_type=jnp.float32)
    y = jnp.maximum(y + b2_ref[...], 0.0)
    o_ref[...] = y.astype(o_ref.dtype)


def my_model_forward(x, w1, b1, w2, b2, *, tile_b=DEFAULT_TILE_B):
    """x: (B, 58) f32.  w1: (58, 32), b1: (1, 32), w2: (32, 13), b2: (1, 13)."""
    B = x.shape[0]
    out_dtype = x.dtype

    # Matmul operands in bf16 (f32 accumulation inside the kernel).
    w1 = w1.astype(jnp.bfloat16)
    w2 = w2.astype(jnp.bfloat16)
    b1 = b1.astype(jnp.float32)
    b2 = b2.astype(jnp.float32)

    # Choose batch tile: small batches -> single tile rounded up to a multiple
    # of 8 (sublane requirement); large batches -> fixed TILE_B for pipelining.
    if B <= tile_b:
        tb = max(8, ((B + 7) // 8) * 8)
    else:
        tb = tile_b
    b_padded = ((B + tb - 1) // tb) * tb
    if b_padded != B:
        x = jnp.pad(x, ((0, b_padded - B), (0, 0)))
    grid = (b_padded // tb,)

    cost = pl.CostEstimate(
        flops=2 * B * (IN_FEATURES * HIDDEN + HIDDEN * OUT_FEATURES),
        transcendentals=0,
        bytes_accessed=(
            4 * B * IN_FEATURES            # read x (f32)
            + 4 * B * OUT_FEATURES         # write output (f32)
            + 2 * (IN_FEATURES * HIDDEN + HIDDEN * OUT_FEATURES)  # bf16 weights
            + 4 * (HIDDEN + OUT_FEATURES)  # f32 biases
        ),
    )

    out = pl.pallas_call(
        mlp_kernel,
        out_shape=jax.ShapeDtypeStruct((b_padded, OUT_FEATURES), out_dtype),
        grid_spec=pltpu.PrefetchScalarGridSpec(
            num_scalar_prefetch=0,
            grid=grid,
            in_specs=[
                # x: one batch tile per grid step (double-buffered by Pallas).
                pl.BlockSpec((tb, IN_FEATURES), lambda i: (i, 0)),
                # Weights / biases: constant index_map -> resident in VMEM.
                pl.BlockSpec(w1.shape, lambda i: (0, 0)),
                pl.BlockSpec(b1.shape, lambda i: (0, 0)),
                pl.BlockSpec(w2.shape, lambda i: (0, 0)),
                pl.BlockSpec(b2.shape, lambda i: (0, 0)),
            ],
            out_specs=pl.BlockSpec((tb, OUT_FEATURES), lambda i: (i, 0)),
        ),
        compiler_params=pltpu.CompilerParams(
            # Batch tiles are independent -> let v7x shard them across both TCs.
            dimension_semantics=("parallel",),
        ),
        cost_estimate=cost,
    )(x, w1, b1, w2, b2)

    return out[:B]


def init_params(key):
    """Deterministic init matching nn.Linear shapes (58->32, 32->13)."""
    k1, k2, k3, k4 = jax.random.split(key, 4)
    # PyTorch Linear default init: U(-1/sqrt(fan_in), 1/sqrt(fan_in))
    lim1 = 1.0 / jnp.sqrt(float(IN_FEATURES))
    lim2 = 1.0 / jnp.sqrt(float(HIDDEN))
    w1 = jax.random.uniform(k1, (IN_FEATURES, HIDDEN), jnp.float32, -lim1, lim1)
    b1 = jax.random.uniform(k2, (1, HIDDEN), jnp.float32, -lim1, lim1)
    w2 = jax.random.uniform(k3, (HIDDEN, OUT_FEATURES), jnp.float32, -lim2, lim2)
    b2 = jax.random.uniform(k4, (1, OUT_FEATURES), jnp.float32, -lim2, lim2)
    return w1, b1, w2, b2


def _reference(x, w1, b1, w2, b2):
    return jnp.maximum(jnp.maximum(x @ w1 + b1, 0.0) @ w2 + b2, 0.0)


if __name__ == "__main__":
    key = jax.random.PRNGKey(0)
    kx, kx2, kp = jax.random.split(key, 3)
    w1, b1, w2, b2 = init_params(kp)

    # Small-batch check (single tile path).
    B = 8
    x = jax.random.normal(kx, (B, IN_FEATURES), jnp.float32)
    out = jax.block_until_ready(my_model_forward(x, w1, b1, w2, b2))
    ref = _reference(x, w1, b1, w2, b2)
    assert out.shape == (B, OUT_FEATURES)
    # bf16 matmul operands with f32 accumulation -> loose tolerance vs f32 ref.
    assert jnp.allclose(out, ref, atol=2e-2, rtol=2e-2)

    # Multi-tile + ragged-batch check (exercises tiling, padding, slicing).
    B2 = 1000
    x2 = jax.random.normal(kx2, (B2, IN_FEATURES), jnp.float32)
    out2 = jax.block_until_ready(
        my_model_forward(x2, w1, b1, w2, b2, tile_b=512))
    ref2 = _reference(x2, w1, b1, w2, b2)
    assert out2.shape == (B2, OUT_FEATURES)
    assert jnp.allclose(out2, ref2, atol=2e-2, rtol=2e-2)

    print("KERNEL_OK")
</pallas_src>

<mosaic_0001>
module attributes {stable_mosaic.version = 11 : i64} {
  func.func @mlp_kernel(%arg0: i32, %arg1: memref<8x58xf32, #tpu.memory_space<vmem>>, %arg2: memref<58x32xbf16, #tpu.memory_space<vmem>>, %arg3: memref<1x32xf32, #tpu.memory_space<vmem>>, %arg4: memref<32x13xbf16, #tpu.memory_space<vmem>>, %arg5: memref<1x13xf32, #tpu.memory_space<vmem>>, %arg6: memref<8x13xf32, #tpu.memory_space<vmem>>) attributes {dimension_semantics = [#tpu.dimension_semantics<parallel>], iteration_bounds = array<i64: 1>, scalar_prefetch = 0 : i64, scratch_operands = 0 : i64, tpu.core_type = #tpu.core_type<tc>, window_params = [{transform_indices = @transform_0, window_bounds = array<i64: 8, 58>}, {pipeline_mode = #tpu.pipeline_mode<synchronous>, transform_indices = @transform_1, window_bounds = array<i64: 58, 32>}, {pipeline_mode = #tpu.pipeline_mode<synchronous>, transform_indices = @transform_2, window_bounds = array<i64: 1, 32>}, {pipeline_mode = #tpu.pipeline_mode<synchronous>, transform_indices = @transform_3, window_bounds = array<i64: 32, 13>}, {pipeline_mode = #tpu.pipeline_mode<synchronous>, transform_indices = @transform_4, window_bounds = array<i64: 1, 13>}, {transform_indices = @transform_5, window_bounds = array<i64: 8, 13>}]} {
    %c0 = arith.constant 0 : index
    %c0_0 = arith.constant 0 : index
    %0 = vector.load %arg1[%c0, %c0_0] : memref<8x58xf32, #tpu.memory_space<vmem>>, vector<8x58xf32>
    %1 = arith.truncf %0 : vector<8x58xf32> to vector<8x58xbf16>
    %c0_1 = arith.constant 0 : index
    %c0_2 = arith.constant 0 : index
    %2 = vector.load %arg2[%c0_1, %c0_2] : memref<58x32xbf16, #tpu.memory_space<vmem>>, vector<58x32xbf16>
    %cst = arith.constant dense<0.000000e+00> : vector<8x32xf32>
    %3 = tpu.matmul %1, %2, %cst {dimension_numbers = #tpu.dot_dimension_numbers<[1], [0], [0], [1], [0, 0, 1, 1], [], []>} : vector<8x58xbf16>, vector<58x32xbf16>, vector<8x32xf32> -> vector<8x32xf32>
    %c0_3 = arith.constant 0 : index
    %c0_4 = arith.constant 0 : index
    %4 = vector.load %arg3[%c0_3, %c0_4] : memref<1x32xf32, #tpu.memory_space<vmem>>, vector<1x32xf32>
    %5 = vector.broadcast %4 : vector<1x32xf32> to vector<8x32xf32>
    %6 = arith.addf %3, %5 : vector<8x32xf32>
    %cst_5 = arith.constant 0.000000e+00 : f32
    %7 = vector.broadcast %cst_5 : f32 to vector<8x32xf32>
    %8 = arith.maximumf %6, %7 : vector<8x32xf32>
    %9 = arith.truncf %8 : vector<8x32xf32> to vector<8x32xbf16>
    %c0_6 = arith.constant 0 : index
    %c0_7 = arith.constant 0 : index
    %10 = vector.load %arg4[%c0_6, %c0_7] : memref<32x13xbf16, #tpu.memory_space<vmem>>, vector<32x13xbf16>
    %cst_8 = arith.constant dense<0.000000e+00> : vector<8x13xf32>
    %11 = tpu.matmul %9, %10, %cst_8 {dimension_numbers = #tpu.dot_dimension_numbers<[1], [0], [0], [1], [0, 0, 1, 1], [], []>} : vector<8x32xbf16>, vector<32x13xbf16>, vector<8x13xf32> -> vector<8x13xf32>
    %c0_9 = arith.constant 0 : index
    %c0_10 = arith.constant 0 : index
    %12 = vector.load %arg5[%c0_9, %c0_10] : memref<1x13xf32, #tpu.memory_space<vmem>>, vector<1x13xf32>
    %13 = vector.broadcast %12 : vector<1x13xf32> to vector<8x13xf32>
    %14 = arith.addf %11, %13 : vector<8x13xf32>
    %cst_11 = arith.constant 0.000000e+00 : f32
    %15 = vector.broadcast %cst_11 : f32 to vector<8x13xf32>
    %16 = arith.maximumf %14, %15 : vector<8x13xf32>
    %c0_12 = arith.constant 0 : index
    %c0_13 = arith.constant 0 : index
    %17 = vector.load %arg6[%c0_12, %c0_13] : memref<8x13xf32, #tpu.memory_space<vmem>>, vector<8x13xf32>
    tpu.vector_store %arg6[%c0_12, %c0_13], %16 {strides = array<i32>} : memref<8x13xf32, #tpu.memory_space<vmem>>, vector<8x13xf32>,
    return
  }
  func.func @transform_0(%arg0: i32) -> (i32, i32) {
    %c0_i32 = arith.constant 0 : i32
    %c0_i32_0 = arith.constant 0 : i32
    return %arg0, %c0_i32 : i32, i32
  }
  func.func @transform_1(%arg0: i32) -> (i32, i32) {
    %c0_i32 = arith.constant 0 : i32
    %c0_i32_0 = arith.constant 0 : i32
    %c0_i32_1 = arith.constant 0 : i32
    return %c0_i32, %c0_i32_0 : i32, i32
  }
  func.func @transform_2(%arg0: i32) -> (i32, i32) {
    %c0_i32 = arith.constant 0 : i32
    %c0_i32_0 = arith.constant 0 : i32
    %c0_i32_1 = arith.constant 0 : i32
    return %c0_i32, %c0_i32_0 : i32, i32
  }
  func.func @transform_3(%arg0: i32) -> (i32, i32) {
    %c0_i32 = arith.constant 0 : i32
    %c0_i32_0 = arith.constant 0 : i32
    %c0_i32_1 = arith.constant 0 : i32
    return %c0_i32, %c0_i32_0 : i32, i32
  }
  func.func @transform_4(%arg0: i32) -> (i32, i32) {
    %c0_i32 = arith.constant 0 : i32
    %c0_i32_0 = arith.constant 0 : i32
    %c0_i32_1 = arith.constant 0 : i32
    return %c0_i32, %c0_i32_0 : i32, i32
  }
  func.func @transform_5(%arg0: i32) -> (i32, i32) {
    %c0_i32 = arith.constant 0 : i32
    %c0_i32_0 = arith.constant 0 : i32
    return %arg0, %c0_i32 : i32, i32
  }
}

</mosaic_0001>

<bundles_post_ra>
// kernel: tpu_custom_call.1
= control target key start
LH: loop header
LB: loop body
LE: loop exit
PB: predicated region body
PF: predicated region fallthrough
CT: control target
= control target key end

     0   :  { %vm66_vm0 = vcmask 1044480   ;;  %v265_v0 = vmov 0.0   ;;  %vm266_vm1 = vmmov 0   ;;  %s328_s0 = inlined_call_operand.vmem [shape: f32[8,58], index: 0, kind: input, shape index: {}]   ;;  %s329_s1 = inlined_call_operand.vmem [shape: bf16[58,32], index: 1, kind: input, shape index: {}]   ;;  %s330_s2 = inlined_call_operand.vmem [shape: f32[1,32], index: 2, kind: input, shape index: {}]   ;;  %s331_s3 = inlined_call_operand.vmem [shape: bf16[32,13], index: 3, kind: input, shape index: {}]   ;;  %s332_s4 = inlined_call_operand.vmem [shape: f32[1,13], index: 4, kind: input, shape index: {}]   ;;  %s333_s5 = inlined_call_operand.hbm [shape: f32[8,13], index: 5, kind: output, shape index: {}]  }
   0x1   :  { %214 = vmatprep.subr.bf16.mxu0 %v265_v0  ;;  %v237_v1 = vld [vmem:[%s329_s1 + $0x18] sm:$0x1f]   ;;  %226 = vmatprep.subr.bf16.mxu1 %v265_v0  ;;  %v238_v3 = vld [vmem:[%s329_s1 + $0x10] sm:$0xff]  }
   0x2   :  { %v68_v2 = vsel %vm66_vm0, %v237_v1, 0  ;;  %222 = vmatprep.mubr.msk.bf16.mxu0 %vm266_vm1, %v265_v0  ;;  %230 = vmatprep.mubr.msk.bf16.mxu1 %vm266_vm1, %v265_v0 }
   0x3   :  { %215 = vmatpush3.bf16.msra.mxu0 %v68_v2 }
   0x4   :  { %216 = vmatprep.subr.bf16.mxu0 %v265_v0 }
   0x5   :  { %10 = vsyncpa [#allocation3], 0  ;;  %v239_v4 = vld [vmem:[%s329_s1 + $0x8] sm:$0xff]   ;;  %v240_v5 = vld [vmem:[%s329_s1] sm:$0xff]   ;;  %vm62_vm2 = vcmask 474112   ;;  %vm135_vm3 = vcmask 261120  }
   0x6   :  { %v22_v6 = vld [vmem:[%s328_s0] sm:$0xff]  ;;  %v241_v8 = vld [vmem:[%s331_s3 + $0x8] sm:$0xff]   ;;  %vm180_vm4 = vcmask 105472  }
   0x7   :  { %217 = vmatpush3.bf16.msra.mxu0 %v238_v3  ;;  %v23_v7 = vpack.c.bf16 %v22_v6, %v22_v6  ;;  %227 = vmatpush3.bf16.msra.mxu1 %v241_v8  ;;  %v242_v9 = vld [vmem:[%s331_s3] sm:$0xff]   ;;  %s267_s3 = smov [#allocation2]  }
   0x8   :  { %218 = vmatprep.subr.bf16.mxu0 %v265_v0  ;;  %228 = vmatprep.subr.bf16.mxu1 %v265_v0  ;;  %v196_v10 = vld [vmem:[%s330_s2] ss:$0 sm:$0xff]  ;;  %s188_s9 = sshll.u32 %s267_s3, 4  ;;  %s189_s9 = int_to_ptr.vmem [resolvable:$true] %s188_s9 }
   0x9   :  { %v202_v18 = vld [vmem:[%s332_s4] ss:$0 sm:$0xff]  ;;  %s243_s2 = scalar_lea.vmem %s189_s9, 128  ;;  %p248_p1 = scmp.lt.s32.totalorder %s189_s9, %s189_s9 }
   0xa   :  { %p244_p0 = scmp.ne.s32.totalorder %s189_s9, %s243_s2  ;;  %p249_p2 = scmp.lt.s32.totalorder %s243_s2, %s243_s2 }
   0xb   :  { %219 = vmatpush3.bf16.msra.mxu0 %v239_v4  ;;  %229 = vmatpush3.bf16.msra.mxu1 %v242_v9 }
   0xc   :  { %220 = vmatprep.subr.bf16.mxu0 %v265_v0  ;;  %p250_p3 = por %p249_p2, %p248_p1 }
   0xe   :  { %p251_p4 = pnand %p250_p3, %p244_p0 }
   0xf   :  { %221 = vmatpush3.bf16.msra.mxu0 %v240_v5 }
  0x12   :  { %223 = vmatmul.mubr.msk.bf16.vlgmr.msra.gmra.mxu0 %vm62_vm2, %v23_v7 }
  0xd2   :  { %v104_v11 = vpop.f32.mrf.mxu0 }
  0xd3   :  { %v105_v12 = vadd.f32 %v196_v10, %v104_v11 }
  0xd4   :  { %v224_v13 = vpop.f32.mrf.mxu0 }
  0xd5   :  { %v110_v14 = vmax.f32 %v105_v12, 0.0 }
  0xd6   :  { %v107_v15 = vpop.f32.mrf.mxu0 }
  0xd7   :  { %v111_v16 = vpack.c.bf16 %v110_v14, %v110_v14 }
  0xd8   :  { %v225_v17 = vpop.f32.mrf.mxu0 }
  0xd9   :  { %231 = vmatmul.mubr.msk.bf16.vlgmr.msra.gmra.mxu1 %vm135_vm3, %v111_v16 }
 0x199   :  { %v173_v19 = vpop.f32.mrf.mxu1 }
 0x19a   :  { %v174_v20 = vadd.f32 %v202_v18, %v173_v19 }
 0x19b   :  { %v232_v21 = vpop.f32.mrf.mxu1 }
 0x19c   :  { %v179_v22 = vmax.f32 %v174_v20, 0.0 }
 0x19d   :  { %v176_v23 = vpop.f32.mrf.mxu1 }
 0x19e   :  { %181 = vst.msk [vmem:[#allocation2] sm:$0xff] %vm180_vm4, %v179_v22 }
 0x19f   :  { %v233_v24 = vpop.f32.mrf.mxu1 }
 0x1a0   :  { %254 = shalt.err (!%p251_p4)
}
 0x1a1   :  { %191 = dma.vmem_to_hbm [thread:$0]  %s189_s9, 128, %s333_s5, [#allocation3]  }
 0x1a2   :  { %263 = dma.done.wait [#allocation3], 128  }
 0x1a3   :  { %264 = vsyncadd [#allocation3], 4294967168 }
 0x1a4   :  { %195 = vsyncpa [#allocation3], 1 }

</bundles_post_ra>
